<compile_context>
chip_gen: v6e
topology: v6e:2x2x1
jax: 0.10.0
libtpu: 0.0.40
codegen_flags: <defaults>
</compile_context>

<pallas_src>
import functools

import numpy as np
import jax
import jax.numpy as jnp
from jax.experimental import pallas as pl
from jax.experimental.pallas import tpu as pltpu

_LOG_EPS = float(np.log(1e-15))  # torch: x[x < 1e-15] = 1e-15, applied in log space


def _stdfcfg_kernel(v_ref, wT_ref, y_ref, o_ref, acc_ref, *,
                    d, tile_n, n_valid, theta):
    """One (batch-tile, sample-tile) grid cell of the CFG stdf estimator.

    v_ref   : (1, 1)  f32 SMEM   bias-correction constant v
    wT_ref  : (d, TB)            w transposed tile (resident across sample axis)
    y_ref   : (TN, d)            pseudo-observation tile for this sample block
    o_ref   : (1, TB)            lane-dense output tile, written on last k step
    acc_ref : (1, TB) f32 VMEM   running sum over samples of clamped log-min
    """
    k = pl.program_id(1)

    @pl.when(k == 0)
    def _init():
        acc_ref[...] = jnp.zeros_like(acc_ref)

    # f32 compute regardless of input dtype.
    # log phi^{-1}(y) = theta * log(-log y)   (Gumbel generator)
    lz = theta * jnp.log(-jnp.log(y_ref[...].astype(jnp.float32)))   # (TN, d)
    lw = jnp.log(wT_ref[...].astype(jnp.float32))                    # (d, TB)

    # log( min_j phi^{-1}(y[i,j]) / w[b,j] )  ==  min_j ( lz[i,j] - lw[j,b] )
    # d is small & static -> unrolled loop; every sub/min is a fully
    # lane-dense (TN, TB) vreg op (batch on lanes), no cross-lane reduce.
    m = lz[:, 0:1] - lw[0:1, :]                                      # (TN, TB)
    for j in range(1, d):
        m = jnp.minimum(m, lz[:, j:j + 1] - lw[j:j + 1, :])
    m = jnp.maximum(m, _LOG_EPS)                                     # clamp x >= 1e-15

    # Mask padded sample rows (global sample index >= n_valid).
    row = jax.lax.broadcasted_iota(jnp.int32, m.shape, 0) + k * tile_n
    m = jnp.where(row < n_valid, m, 0.0)

    acc_ref[...] += jnp.sum(m, axis=0, keepdims=True)                # (1, TB)

    @pl.when(k == pl.num_programs(1) - 1)
    def _finalize():
        a = v_ref[0, 0] - acc_ref[...] * (1.0 / n_valid)
        o_ref[...] = jnp.exp(a).astype(o_ref.dtype)


def _round_up(x, m):
    return (x + m - 1) // m * m


def stdfcfg_forward(w, y, theta=1.0, *, tile_b=128, tile_n=128):
    """Pallas forward of stdfCFG: returns shape (w.shape[0],) float32."""
    w = jnp.asarray(w)
    y = jnp.asarray(y)
    bsz, d = w.shape
    n, d_y = y.shape
    if d != d_y:
        raise ValueError(f"w.shape[1]={d} must match y.shape[1]={d_y}")

    # Bias-correction constant (depends only on module constants n, theta).
    u = jnp.arange(1, n + 1, dtype=jnp.float32) / jnp.float32(n + 1)
    v = jnp.mean(jnp.float32(theta) * jnp.log(-jnp.log(u)))
    v = v.reshape(1, 1).astype(jnp.float32)

    # Layout plumbing: batch on the 128-lane axis for both input and output.
    b_pad = _round_up(bsz, tile_b)
    n_pad = _round_up(n, tile_n)
    wT = jnp.pad(jnp.transpose(w), ((0, 0), (0, b_pad - bsz)), constant_values=1.0)
    y_p = jnp.pad(y, ((0, n_pad - n), (0, 0)), constant_values=0.5)

    nb = b_pad // tile_b
    nk = n_pad // tile_n

    kernel = functools.partial(_stdfcfg_kernel, d=d, tile_n=tile_n,
                               n_valid=n, theta=float(theta))

    cost = pl.CostEstimate(
        flops=int(2 * b_pad * n_pad * (d + 1)),
        transcendentals=int(b_pad * d * nk + 2 * n_pad * d * nb + b_pad),
        bytes_accessed=int(4 * (d * b_pad + n_pad * d * nb + b_pad)),
    )

    out = pl.pallas_call(
        kernel,
        out_shape=jax.ShapeDtypeStruct((1, b_pad), jnp.float32),
        grid=(nb, nk),
        in_specs=[
            pl.BlockSpec(memory_space=pltpu.SMEM),                  # v (scalar)
            pl.BlockSpec((d, tile_b), lambda b, k: (0, b)),         # w^T, resident over k
            pl.BlockSpec((tile_n, d), lambda b, k: (k, 0)),         # y samples, streamed
        ],
        out_specs=pl.BlockSpec((1, tile_b), lambda b, k: (0, b)),   # lane-dense output
        scratch_shapes=[pltpu.VMEM((1, tile_b), jnp.float32)],
        compiler_params=pltpu.CompilerParams(
            dimension_semantics=("parallel", "arbitrary")),
        cost_estimate=cost,
    )(v, wT, y_p)

    return out[0, :bsz]


if __name__ == "__main__":
    theta = 1.0          # GumbelPhi(torch.tensor(1.0)): phi^{-1}(u) = (-log u)**theta

    key = jax.random.PRNGKey(0)
    k_y, k_w = jax.random.split(key)

    # y: (n, d) pseudo-observations in (0, 1); w: (batch, d) strictly positive.
    n, d, bsz = 200, 5, 256
    y = jax.random.uniform(k_y, (n, d), dtype=jnp.float32, minval=0.01, maxval=0.99)
    w = jax.random.uniform(k_w, (bsz, d), dtype=jnp.float32, minval=0.05, maxval=1.0)

    out = stdfcfg_forward(w, y, theta=theta)
    jax.block_until_ready(out)

    # Pure-JAX reference mirroring the torch forward exactly.
    phi_inv = lambda q: (-jnp.log(q)) ** theta
    x = jnp.min(phi_inv(jnp.transpose(y))[None, :, :] / w[:, :, None], axis=1)  # (bsz, n)
    x = jnp.maximum(x, 1e-15)
    u_ref = jnp.arange(1, n + 1, dtype=jnp.float32) / jnp.float32(n + 1)
    v_ref = jnp.mean(jnp.log(phi_inv(u_ref)))
    ref = jnp.exp(v_ref - jnp.mean(jnp.log(x), axis=1))

    np.testing.assert_allclose(np.asarray(out), np.asarray(ref), rtol=1e-4, atol=1e-6)
    print("KERNEL_OK")
</pallas_src>

<mosaic_0001>
module attributes {stable_mosaic.version = 11 : i64} {
  func.func @_stdfcfg_kernel(%arg0: i32, %arg1: i32, %arg2: memref<1x1xf32, #tpu.memory_space<smem>>, %arg3: memref<5x128xf32, #tpu.memory_space<vmem>>, %arg4: memref<128x5xf32, #tpu.memory_space<vmem>>, %arg5: memref<1x128xf32, #tpu.memory_space<vmem>>, %arg6: memref<1x128xf32, #tpu.memory_space<vmem>>) attributes {dimension_semantics = [#tpu.dimension_semantics<parallel>, #tpu.dimension_semantics<arbitrary>], iteration_bounds = array<i64: 2, 2>, scalar_prefetch = 0 : i64, scratch_operands = 1 : i64, tpu.core_type = #tpu.core_type<tc>, window_params = [{transform_indices = @transform_0, window_bounds = array<i64: 1, 1>}, {transform_indices = @transform_1, window_bounds = array<i64: 5, 128>}, {transform_indices = @transform_2, window_bounds = array<i64: 128, 5>}, {transform_indices = @transform_3, window_bounds = array<i64: 1, 128>}]} {
    %c0_i32 = arith.constant 0 : i32
    %0 = arith.cmpi eq, %arg1, %c0_i32 : i32
    %1 = arith.extui %0 : i1 to i32
    %c0_i32_0 = arith.constant 0 : i32
    %2 = arith.cmpi ne, %1, %c0_i32_0 : i32
    scf.if %2 {
      %cst_13 = arith.constant 0.000000e+00 : f32
      %59 = vector.broadcast %cst_13 : f32 to vector<1x128xf32>
      %c0_14 = arith.constant 0 : index
      %c0_15 = arith.constant 0 : index
      %60 = vector.load %arg6[%c0_14, %c0_15] : memref<1x128xf32, #tpu.memory_space<vmem>>, vector<1x128xf32>
      tpu.vector_store %arg6[%c0_14, %c0_15], %59 {strides = array<i32>} : memref<1x128xf32, #tpu.memory_space<vmem>>, vector<1x128xf32>,
    } else {
    }
    %c0 = arith.constant 0 : index
    %c0_1 = arith.constant 0 : index
    %3 = vector.load %arg4[%c0, %c0_1] : memref<128x5xf32, #tpu.memory_space<vmem>>, vector<128x5xf32>
    %4 = math.log %3 : vector<128x5xf32>
    %cst = arith.constant 0.000000e+00 : f32
    %5 = vector.broadcast %cst : f32 to vector<128x5xf32>
    %6 = arith.subf %5, %4 : vector<128x5xf32>
    %7 = math.log %6 : vector<128x5xf32>
    %cst_2 = arith.constant 1.000000e+00 : f32
    %8 = vector.broadcast %cst_2 : f32 to vector<128x5xf32>
    %9 = arith.mulf %8, %7 : vector<128x5xf32>
    %c0_3 = arith.constant 0 : index
    %c0_4 = arith.constant 0 : index
    %10 = vector.load %arg3[%c0_3, %c0_4] : memref<5x128xf32, #tpu.memory_space<vmem>>, vector<5x128xf32>
    %11 = math.log %10 : vector<5x128xf32>
    %12 = vector.extract_strided_slice %9 {offsets = [0, 0], sizes = [128, 1], strides = [1, 1]} : vector<128x5xf32> to vector<128x1xf32>
    %13 = vector.extract_strided_slice %11 {offsets = [0, 0], sizes = [1, 128], strides = [1, 1]} : vector<5x128xf32> to vector<1x128xf32>
    %14 = vector.broadcast %12 : vector<128x1xf32> to vector<128x128xf32>
    %15 = vector.broadcast %13 : vector<1x128xf32> to vector<128x128xf32>
    %16 = arith.subf %14, %15 : vector<128x128xf32>
    %17 = vector.extract_strided_slice %9 {offsets = [0, 1], sizes = [128, 1], strides = [1, 1]} : vector<128x5xf32> to vector<128x1xf32>
    %18 = vector.extract_strided_slice %11 {offsets = [1, 0], sizes = [1, 128], strides = [1, 1]} : vector<5x128xf32> to vector<1x128xf32>
    %19 = vector.broadcast %17 : vector<128x1xf32> to vector<128x128xf32>
    %20 = vector.broadcast %18 : vector<1x128xf32> to vector<128x128xf32>
    %21 = arith.subf %19, %20 : vector<128x128xf32>
    %22 = arith.minimumf %16, %21 : vector<128x128xf32>
    %23 = vector.extract_strided_slice %9 {offsets = [0, 2], sizes = [128, 1], strides = [1, 1]} : vector<128x5xf32> to vector<128x1xf32>
    %24 = vector.extract_strided_slice %11 {offsets = [2, 0], sizes = [1, 128], strides = [1, 1]} : vector<5x128xf32> to vector<1x128xf32>
    %25 = vector.broadcast %23 : vector<128x1xf32> to vector<128x128xf32>
    %26 = vector.broadcast %24 : vector<1x128xf32> to vector<128x128xf32>
    %27 = arith.subf %25, %26 : vector<128x128xf32>
    %28 = arith.minimumf %22, %27 : vector<128x128xf32>
    %29 = vector.extract_strided_slice %9 {offsets = [0, 3], sizes = [128, 1], strides = [1, 1]} : vector<128x5xf32> to vector<128x1xf32>
    %30 = vector.extract_strided_slice %11 {offsets = [3, 0], sizes = [1, 128], strides = [1, 1]} : vector<5x128xf32> to vector<1x128xf32>
    %31 = vector.broadcast %29 : vector<128x1xf32> to vector<128x128xf32>
    %32 = vector.broadcast %30 : vector<1x128xf32> to vector<128x128xf32>
    %33 = arith.subf %31, %32 : vector<128x128xf32>
    %34 = arith.minimumf %28, %33 : vector<128x128xf32>
    %35 = vector.extract_strided_slice %9 {offsets = [0, 4], sizes = [128, 1], strides = [1, 1]} : vector<128x5xf32> to vector<128x1xf32>
    %36 = vector.extract_strided_slice %11 {offsets = [4, 0], sizes = [1, 128], strides = [1, 1]} : vector<5x128xf32> to vector<1x128xf32>
    %37 = vector.broadcast %35 : vector<128x1xf32> to vector<128x128xf32>
    %38 = vector.broadcast %36 : vector<1x128xf32> to vector<128x128xf32>
    %39 = arith.subf %37, %38 : vector<128x128xf32>
    %40 = arith.minimumf %34, %39 : vector<128x128xf32>
    %cst_5 = arith.constant -34.5387764 : f32
    %41 = vector.broadcast %cst_5 : f32 to vector<128x128xf32>
    %42 = arith.maximumf %40, %41 : vector<128x128xf32>
    %43 = tpu.iota {dimensions = array<i32: 0>} : vector<128x128xi32>
    %c128_i32 = arith.constant 128 : i32
    %44 = arith.muli %arg1, %c128_i32 : i32
    %45 = vector.broadcast %44 : i32 to vector<128x128xi32>
    %46 = arith.addi %43, %45 : vector<128x128xi32>
    %c200_i32 = arith.constant 200 : i32
    %47 = vector.broadcast %c200_i32 : i32 to vector<128x128xi32>
    %48 = arith.cmpi slt, %46, %47 : vector<128x128xi32>
    %cst_6 = arith.constant 0.000000e+00 : f32
    %49 = vector.broadcast %cst_6 : f32 to vector<128x128xf32>
    %50 = arith.select %48, %42, %49 : vector<128x128xi1>, vector<128x128xf32>
    %c0_7 = arith.constant 0 : index
    %c0_8 = arith.constant 0 : index
    %51 = vector.load %arg6[%c0_7, %c0_8] : memref<1x128xf32, #tpu.memory_space<vmem>>, vector<1x128xf32>
    %cst_9 = arith.constant dense<0.000000e+00> : vector<128xf32>
    %52 = vector.multi_reduction <add>, %50, %cst_9 [0] : vector<128x128xf32> to vector<128xf32>
    %53 = vector.shape_cast %52 : vector<128xf32> to vector<1x128xf32>
    %54 = arith.addf %51, %53 : vector<1x128xf32>
    %c0_10 = arith.constant 0 : index
    %c0_11 = arith.constant 0 : index
    %55 = vector.load %arg6[%c0_10, %c0_11] : memref<1x128xf32, #tpu.memory_space<vmem>>, vector<1x128xf32>
    tpu.vector_store %arg6[%c0_10, %c0_11], %54 {strides = array<i32>} : memref<1x128xf32, #tpu.memory_space<vmem>>, vector<1x128xf32>,
    %c1_i32 = arith.constant 1 : i32
    %56 = arith.cmpi eq, %arg1, %c1_i32 : i32
    %57 = arith.extui %56 : i1 to i32
    %c0_i32_12 = arith.constant 0 : i32
    %58 = arith.cmpi ne, %57, %c0_i32_12 : i32
    scf.if %58 {
      %c0_13 = arith.constant 0 : index
      %c0_14 = arith.constant 0 : index
      %59 = memref.load %arg2[%c0_13, %c0_14] : memref<1x1xf32, #tpu.memory_space<smem>>
      %c0_15 = arith.constant 0 : index
      %c0_16 = arith.constant 0 : index
      %60 = vector.load %arg6[%c0_15, %c0_16] : memref<1x128xf32, #tpu.memory_space<vmem>>, vector<1x128xf32>
      %cst_17 = arith.constant 5.000000e-03 : f32
      %61 = vector.broadcast %cst_17 : f32 to vector<1x128xf32>
      %62 = arith.mulf %60, %61 : vector<1x128xf32>
      %63 = vector.broadcast %59 : f32 to vector<1x128xf32>
      %64 = arith.subf %63, %62 : vector<1x128xf32>
      %65 = math.exp %64 : vector<1x128xf32>
      %c0_18 = arith.constant 0 : index
      %c0_19 = arith.constant 0 : index
      %66 = vector.load %arg5[%c0_18, %c0_19] : memref<1x128xf32, #tpu.memory_space<vmem>>, vector<1x128xf32>
      tpu.vector_store %arg5[%c0_18, %c0_19], %65 {strides = array<i32>} : memref<1x128xf32, #tpu.memory_space<vmem>>, vector<1x128xf32>,
    } else {
    }
    return
  }
  func.func @transform_0(%arg0: i32, %arg1: i32) -> (i32, i32) {
    %c0_i32 = arith.constant 0 : i32
    %c0_i32_0 = arith.constant 0 : i32
    %c0_i32_1 = arith.constant 0 : i32
    return %c0_i32, %c0_i32_0 : i32, i32
  }
  func.func @transform_1(%arg0: i32, %arg1: i32) -> (i32, i32) {
    %c0_i32 = arith.constant 0 : i32
    %c0_i32_0 = arith.constant 0 : i32
    return %c0_i32, %arg0 : i32, i32
  }
  func.func @transform_2(%arg0: i32, %arg1: i32) -> (i32, i32) {
    %c0_i32 = arith.constant 0 : i32
    %c0_i32_0 = arith.constant 0 : i32
    return %arg1, %c0_i32 : i32, i32
  }
  func.func @transform_3(%arg0: i32, %arg1: i32) -> (i32, i32) {
    %c0_i32 = arith.constant 0 : i32
    %c0_i32_0 = arith.constant 0 : i32
    return %c0_i32, %arg0 : i32, i32
  }
}

</mosaic_0001>

<bundles_post_ra>
// kernel: tpu_custom_call.1
= control target key start
LH: loop header
LB: loop body
LE: loop exit
PB: predicated region body
PF: predicated region fallthrough
CT: control target
= control target key end

     0   :  { %s1813_s0 = inlined_call_operand.<no memory space> [shape: f32[1,1], index: 0, kind: input, shape index: {}]   ;;  %s1814_s1 = inlined_call_operand.vmem [shape: f32[5,256], index: 1, kind: input, shape index: {}]   ;;  %s1815_s2 = inlined_call_operand.vmem [shape: f32[256,5], index: 2, kind: input, shape index: {}]   ;;  %s1816_s3 = inlined_call_operand.hbm [shape: f32[1,256], index: 3, kind: output, shape index: {}]  }
   0x1   :  { %8 = sst [smem:[#allocation3]] %s1813_s0 }
   0x2   :  { %9 = vsyncpa [#allocation5], 0 }
   0x3   :  { %11 = vsyncpa [#allocation5 + $0x1], 0  ;;  %s1309_s14 = smov 0   ;;  %s1311_s15 = smov 0  }
   0x4   :  { %s1313_s16 = smov 0   ;;  %s1315_s17 = smov 0  }
   0x5   :  { %s1317_s18 = smov 0   ;;  %s1319_s19 = smov 0  }
   0x6   :  { %s1321_s20 = smov 0   ;;  %s1323_s21 = smov 0  }
   0x7 LB: > { %s1014_s0 = sadd.s32 4294967295, %s1277_s21   ;;  %s1015_s22 = sadd.s32 4294967294, %s1277_s21   ;;  %s1277_s21 = sphi %s1323_s21, %s17_s21   ;;  %s1273_s20 = sphi %s1321_s20, %s1825_s20   ;;  %s1269_s19 = sphi %s1319_s19, %s1824_s19   ;;  %s1265_s18 = sphi %s1317_s18, %s1823_s18   ;;  %s1261_s17 = sphi %s1315_s17, %s1822_s17   ;;  %s1257_s16 = sphi %s1313_s16, %s1821_s16   ;;  %s1253_s15 = sphi %s1311_s15, %s1820_s15   ;;  %s1249_s14 = sphi %s1309_s14, %s1819_s14  }
   0x8   : > { %s26_s23 = sadd.s32 1, %s1269_s19  ;;  %s29_s24 = sadd.s32 1, %s1273_s20 }
   0x9   : > { %p27_p0 = scmp.ge.s32.totalorder %s26_s23, 2  ;;  %p119_p1 = scmp.ne.s32.totalorder %s1257_s16, %s1253_s15 }
   0xa   : > { %p120_p2 = scmp.eq.s32.totalorder %s1014_s0, 3  ;;  %p125_p4 = scmp.ne.s32.totalorder %s1253_s15, %s1249_s14 }
   0xb   : > { %s1827_s23 = smov (%p27_p0, %s26_s23), 0  ;;  %s1829_s24 = smov (!%p27_p0, %s29_s24), %s1273_s20 }
   0xc   : > { %p1358_p3 = por %p120_p2, %p119_p1  ;;  %p31_p5 = scmp.ge.s32.totalorder %s1829_s24, 2 }
   0xd   : > { %p126_p6 = scmp.eq.s32.totalorder %s1015_s22, 3  ;;  %p1018_p7 = scmp.ge.s32.totalorder %s1277_s21, 1 }
   0xe   : > { %p163_p8 = scmp.lt.s32.totalorder %s1277_s21, 5  ;;  %s1831_s24 = smov (%p31_p5, %s1829_s24), 0 }
   0xf   : > { %p1368_p9 = por %p126_p6, %p125_p4  ;;  %s106_s27 = ssub.s32 %s1273_s20, %s1831_s24 }
  0x10   : > { %p164_p10 = pnand %p1018_p7, %p163_p8  ;;  %s109_s28 = sadd.s32 1, %s1257_s16 }
  0x11   : > { %p107_p11 = scmp.eq.s32.totalorder %s106_s27, 0  ;;  %s188_s30 = sand.u32 (!%p164_p10), 1, %s1253_s15  }
  0x12   : > { %167 = sbr.rel (%p164_p10) target bundleno = 435 (0x1b3), region = 32  ;;  %p190_p12 = scmp.lt.s32.totalorder (!%p164_p10), %s1265_s18, 1 }
  0x13   : > { %s1376_s29 = scalar_select %p107_p11, %s1257_s16, %s109_s28  }
  0x14   : > { %s1020_s4 = sshll.u32 (!%p164_p10), %s1261_s17, 4  ;;  %s1394_s0 = scalar_lea.vmem (!%p164_p10), [#allocation4], %s188_s30 }
  0x15   : > { %p195_p13 = scmp.lt.s32.totalorder (!%p164_p10), %s1020_s4, 31  ;;  %p1022_p0 = scmp.ne.s32.totalorder (!%p164_p10), %s1261_s17, 0 }
  0x17   : > { %s191_s5 = scalar_select %p190_p12, %s1265_s18, 1 }
  0x18   : > { %s1833_s4 = smov (!%p195_p13, %s1020_s4), 31  ;;  %203 = sbr.rel (%p1022_p0) target bundleno = 31 (0x1f), region = 36 }
  0x19   : > { %s1019_s6 = sshll.u32 %s191_s5, 3  ;;  %s1021_s10 = sshll.u32 %s1833_s4, 3 }
  0x1a   : > { %s1385_s9 = scalar_lea.vmem %s1814_s1, %s1019_s6  ;;  %s1390_s13 = scalar_lea.vmem %s1815_s2, %s1021_s10 }
  0x1d   : > { %v1279_v0 = vmov 0.0  }
  0x1e   : > { %204 = vst [vmem:[#allocation2] sm:$0x1] %v1279_v0 }
  0x1f PF: > { %v207_v1 = vld [vmem:[%s1390_s13 + $0x10] sm:$0xff]  ;;  %v205_v2 = vld [vmem:[%s1390_s13] sm:$0xff]  ;;  %v208_v3 = vld [vmem:[%s1390_s13 + $0x18] sm:$0xff]  ;;  %v1280_v4 = vmov 0   ;;  %s1023_s22 = sshll.u32 %s1261_s17, 7  ;;  %p1024_p1 = scmp.ne.s32.totalorder %s1261_s17, 1 }
  0x20   : > { %1106 = vset.pattern.permute.xlu1 %v1280_v4  ;;  %1105 = vset.pattern.permute.xlu0 %v1280_v4  ;;  %1117 = vlog2.f32 %v207_v1  ;;  %v206_v5 = vld [vmem:[%s1390_s13 + $0x8] sm:$0xff]  ;;  %v209_v7 = vld [vmem:[%s1390_s13 + $0x20] sm:$0xff]  ;;  %v212_v8 = vld [vmem:[%s1390_s13 + $0x38] sm:$0xff]  ;;  %s915_s27 = sld [smem:[#allocation3]] (!%p1024_p1) }
  0x21   : > { %1119 = vlog2.f32 %v205_v2  ;;  %v210_v6 = vld [vmem:[%s1390_s13 + $0x28] sm:$0xff]  ;;  %v211_v9 = vld [vmem:[%s1390_s13 + $0x30] sm:$0xff]  ;;  %v213_v11 = vld [vmem:[%s1390_s13 + $0x40] sm:$0xff] }
  0x22   : > { %1121 = vlog2.f32 %v208_v3  ;;  %v214_v10 = vld [vmem:[%s1390_s13 + $0x48] sm:$0xff]  ;;  %v216_v12 = vld [vmem:[%s1390_s13 + $0x58] sm:$0xff]  ;;  %v215_v13 = vld [vmem:[%s1390_s13 + $0x50] sm:$0xff] }
  0x23   : > { %1123 = vlog2.f32 %v206_v5  ;;  %v218_v14 = vld [vmem:[%s1390_s13 + $0x68] sm:$0xff]  ;;  %v217_v15 = vld [vmem:[%s1390_s13 + $0x60] sm:$0xff]  ;;  %v220_v17 = vld [vmem:[%s1390_s13 + $0x78] sm:$0xff] }
  0x24   : > { %1125 = vlog2.f32 %v210_v6  ;;  %v219_v20 = vld [vmem:[%s1390_s13 + $0x70] sm:$0xff] }
  0x25   : > { %1127 = vlog2.f32 %v209_v7 }
  0x26   : > { %1129 = vlog2.f32 %v212_v8 }
  0x27   : > { %1131 = vlog2.f32 %v211_v9 }
  0x28   : > { %1133 = vlog2.f32 %v214_v10 }
  0x29   : > { %1135 = vlog2.f32 %v213_v11 }
  0x2a   : > { %1137 = vlog2.f32 %v216_v12 }
  0x2b   : > { %1139 = vlog2.f32 %v215_v13 }
  0x2c   : > { %1141 = vlog2.f32 %v218_v14 }
  0x2d   : > { %v1118_v16 = vpop.eup %1117  ;;  %1143 = vlog2.f32 %v217_v15 }
  0x2e   : > { %v1120_v18 = vpop.eup %1119  ;;  %v226_v19 = vmul.f32 0.6931472, %v1118_v16  ;;  %1145 = vlog2.f32 %v220_v17 }
  0x2f   : > { %v1122_v21 = vpop.eup %1121  ;;  %v222_v22 = vmul.f32 0.6931472, %v1120_v18  ;;  %1147 = vlog2.f32 %v219_v20 }
  0x30   : > { %v1124_v23 = vpop.eup %1123  ;;  %v255_v24 = vsub.f32 0.0, %v226_v19  ;;  %v228_v25 = vmul.f32 0.6931472, %v1122_v21 }
  0x31   : > { %v1126_v26 = vpop.eup %1125  ;;  %v253_v27 = vsub.f32 0.0, %v222_v22  ;;  %v224_v28 = vmul.f32 0.6931472, %v1124_v23 }
  0x32   : > { %v1128_v29 = vpop.eup %1127  ;;  %1149 = vlog2.f32 %v255_v24  ;;  %v256_v30 = vsub.f32 0.0, %v228_v25  ;;  %v232_v31 = vmul.f32 0.6931472, %v1126_v26 }
  0x33   : > { %v1130_v32 = vpop.eup %1129  ;;  %1151 = vlog2.f32 %v253_v27  ;;  %v254_v33 = vsub.f32 0.0, %v224_v28  ;;  %v230_v34 = vmul.f32 0.6931472, %v1128_v29 }
  0x34   : > { %v1132_v35 = vpop.eup %1131  ;;  %1153 = vlog2.f32 %v256_v30  ;;  %v258_v36 = vsub.f32 0.0, %v232_v31  ;;  %v236_v37 = vmul.f32 0.6931472, %v1130_v32 }
  0x35   : > { %v1134_v38 = vpop.eup %1133  ;;  %1155 = vlog2.f32 %v254_v33  ;;  %v257_v39 = vsub.f32 0.0, %v230_v34  ;;  %v234_v40 = vmul.f32 0.6931472, %v1132_v35  ;;  %v1281_v34 = vmov 1  }
  0x36   : > { %v1136_v41 = vpop.eup %1135  ;;  %1157 = vlog2.f32 %v258_v36  ;;  %v260_v42 = vsub.f32 0.0, %v236_v37  ;;  %v240_v43 = vmul.f32 0.6931472, %v1134_v38  ;;  %v1282_v35 = vmov 2  }
  0x37   : > { %v1138_v44 = vpop.eup %1137  ;;  %1159 = vlog2.f32 %v257_v39  ;;  %v259_v45 = vsub.f32 0.0, %v234_v40  ;;  %v238_v46 = vmul.f32 0.6931472, %v1136_v41  ;;  %v1283_v36 = vmov 3  }
  0x38   : > { %v1140_v47 = vpop.eup %1139  ;;  %1161 = vlog2.f32 %v260_v42  ;;  %v262_v48 = vsub.f32 0.0, %v240_v43  ;;  %v244_v49 = vmul.f32 0.6931472, %v1138_v44  ;;  %v1284_v37 = vmov 4   ;;  %v301_v43 = vld [vmem:[%s1385_s9] sm:$0x1f] }
  0x39   : > { %v1142_v50 = vpop.eup %1141  ;;  %1163 = vlog2.f32 %v259_v45  ;;  %v261_v51 = vsub.f32 0.0, %v238_v46  ;;  %v242_v52 = vmul.f32 0.6931472, %v1140_v47 }
  0x3a   : > { %v1144_v53 = vpop.eup %1143  ;;  %1165 = vlog2.f32 %v262_v48  ;;  %v264_v56 = vsub.f32 0.0, %v244_v49  ;;  %v248_v57 = vmul.f32 0.6931472, %v1142_v50  ;;  %v384_v49 = vlaneseq }
  0x3b   : > { %v1146_v54 = vpop.eup %1145  ;;  %1167 = vlog2.f32 %v261_v51  ;;  %v263_v59 = vsub.f32 0.0, %v242_v52  ;;  %v246_v60 = vmul.f32 0.6931472, %v1144_v53 }
  0x3c   : > { %v1148_v55 = vpop.eup %1147  ;;  %1169 = vlog2.f32 %v264_v56  ;;  %v266_v3 = vsub.f32 0.0, %v248_v57  ;;  %v252_v4 = vmul.f32 0.6931472, %v1146_v54  ;;  %v1532_v52 = vshrl.u32 %v384_v49, 7 }
  0x3d   : > { %1171 = vlog2.f32 %v263_v59  ;;  %v265_v7 = vsub.f32 0.0, %v246_v60  ;;  %v250_v8 = vmul.f32 0.6931472, %v1148_v55 }
  0x3e   : > { %1173 = vlog2.f32 %v266_v3  ;;  %v268_v11 = vsub.f32 0.0, %v252_v4  ;;  %v470_v56 = vsub.s32 1, %v1532_v52 }
  0x3f   : > { %v1150_v58 = vpop.eup %1149  ;;  %1175 = vlog2.f32 %v265_v7  ;;  %v267_v14 = vsub.f32 0.0, %v250_v8 }
  0x40   : > { %v1152_v61 = vpop.eup %1151  ;;  %v1413_v62 = vmul.f32 0.6931472, %v1150_v58  ;;  %1177 = vlog2.f32 %v268_v11  ;;  %v386_v58 = vsub.s32 0, %v1532_v52 }
  0x41   : > { %v1154_v63 = vpop.eup %1153  ;;  %v1415_v0 = vmul.f32 0.6931472, %v1152_v61  ;;  %1179 = vlog2.f32 %v267_v14 }
  0x42   : > { %v1156_v1 = vpop.eup %1155  ;;  %316 = vperm.xlu1 %1106, %v1413_v62   ;;  %v1418_v2 = vmul.f32 0.6931472, %v1154_v63  ;;  %1181 = vlog2.f32 %v301_v43 }
  0x43   : > { %v1158_v5 = vpop.eup %1157  ;;  %306 = vperm.xlu0 %1105, %v1415_v0   ;;  %v1421_v6 = vmul.f32 0.6931472, %v1156_v1 }
  0x44   : > { %v1160_v9 = vpop.eup %1159  ;;  %v1424_v10 = vmul.f32 0.6931472, %v1158_v5 }
  0x45   : > { %v1162_v12 = vpop.eup %1161  ;;  %v1427_v13 = vmul.f32 0.6931472, %v1160_v9 }
  0x46   : > { %321 = vperm.xlu1 %1106, %v1418_v2   ;;  %v1164_v15 = vpop.eup %1163  ;;  %v1430_v16 = vmul.f32 0.6931472, %v1162_v12 }
  0x47   : > { %311 = vperm.xlu0 %1105, %v1421_v6   ;;  %v1166_v17 = vpop.eup %1165  ;;  %v1433_v18 = vmul.f32 0.6931472, %v1164_v15 }
  0x48   : > { %v1168_v19 = vpop.eup %1167  ;;  %v1436_v20 = vmul.f32 0.6931472, %v1166_v17 }
  0x49   : > { %v1170_v21 = vpop.eup %1169  ;;  %v1439_v22 = vmul.f32 0.6931472, %v1168_v19 }
  0x4a   : > { %331 = vperm.xlu1 %1106, %v1424_v10   ;;  %v1172_v23 = vpop.eup %1171  ;;  %v1442_v24 = vmul.f32 0.6931472, %v1170_v21 }
  0x4b   : > { %326 = vperm.xlu0 %1105, %v1427_v13   ;;  %v1174_v25 = vpop.eup %1173  ;;  %v1445_v26 = vmul.f32 0.6931472, %v1172_v23 }
  0x4c   : > { %v1176_v27 = vpop.eup %1175  ;;  %v1448_v28 = vmul.f32 0.6931472, %v1174_v25 }
  0x4d   : > { %v1178_v29 = vpop.eup %1177  ;;  %v1451_v30 = vmul.f32 0.6931472, %v1176_v27 }
  0x4e   : > { %341 = vperm.xlu1 %1106, %v1430_v16   ;;  %v1180_v31 = vpop.eup %1179  ;;  %v1454_v32 = vmul.f32 0.6931472, %v1178_v29 }
  0x4f   : > { %336 = vperm.xlu0 %1105, %v1433_v18   ;;  %v1457_v33 = vmul.f32 0.6931472, %v1180_v31  ;;  %v1182_v54 = vpop.eup %1181 }
  0x50   : > { %v1541_v57 = vmul.f32 0.6931472, %v1182_v54 }
  0x52   : > { %351 = vperm.xlu1 %1106, %v1436_v20   ;;  %v1551_v61 = vrot.slane %v1541_v57, %v470_v56 }
  0x53   : > { %346 = vperm.xlu0 %1105, %v1439_v22  }
  0x56   : > { %361 = vperm.xlu1 %1106, %v1442_v24  }
  0x57   : > { %356 = vperm.xlu0 %1105, %v1445_v26  }
  0x5a   : > { %371 = vperm.xlu1 %1106, %v1448_v28  }
  0x5b   : > { %366 = vperm.xlu0 %1105, %v1451_v30  }
  0x5e   : > { %381 = vperm.xlu1 %1106, %v1454_v32  }
  0x5f   : > { %376 = vperm.xlu0 %1105, %v1457_v33  }
  0x62   : > { %1108 = vset.pattern.permute.xlu1 %v1281_v34 }
  0x63   : > { %1107 = vset.pattern.permute.xlu0 %v1281_v34  ;;  %409 = vperm.xlu1 %1108, %v1421_v6  }
  0x64   : > { %405 = vperm.xlu0 %1107, %v1415_v0  }
  0x67   : > { %413 = vperm.xlu1 %1108, %v1413_v62  }
  0x68   : > { %417 = vperm.xlu0 %1107, %v1418_v2  }
  0x6b   : > { %421 = vperm.xlu1 %1108, %v1427_v13  }
  0x6c   : > { %425 = vperm.xlu0 %1107, %v1424_v10  }
  0x6f   : > { %429 = vperm.xlu1 %1108, %v1433_v18  }
  0x70   : > { %433 = vperm.xlu0 %1107, %v1430_v16  }
  0x73   : > { %437 = vperm.xlu1 %1108, %v1439_v22  }
  0x74   : > { %441 = vperm.xlu0 %1107, %v1436_v20  }
  0x77   : > { %445 = vperm.xlu1 %1108, %v1445_v26  }
  0x78   : > { %449 = vperm.xlu0 %1107, %v1442_v24  }
  0x7b   : > { %453 = vperm.xlu1 %1108, %v1451_v30  }
  0x7c   : > { %457 = vperm.xlu0 %1107, %v1448_v28  }
  0x7f   : > { %461 = vperm.xlu1 %1108, %v1457_v33  }
  0x80   : > { %465 = vperm.xlu0 %1107, %v1454_v32  }
  0x83   : > { %1109 = vset.pattern.permute.xlu1 %v1282_v35 }
  0x84   : > { %1110 = vset.pattern.permute.xlu0 %v1282_v35  ;;  %505 = vperm.xlu1 %1109, %v1415_v0  }
  0x85   : > { %509 = vperm.xlu0 %1110, %v1421_v6  }
  0x88   : > { %513 = vperm.xlu1 %1109, %v1413_v62  }
  0x89   : > { %521 = vperm.xlu0 %1110, %v1427_v13  }
  0x8c   : > { %517 = vperm.xlu1 %1109, %v1418_v2  }
  0x8d   : > { %529 = vperm.xlu0 %1110, %v1433_v18  }
  0x90   : > { %525 = vperm.xlu1 %1109, %v1424_v10  }
  0x91   : > { %537 = vperm.xlu0 %1110, %v1439_v22  }
  0x94   : > { %533 = vperm.xlu1 %1109, %v1430_v16  }
  0x95   : > { %545 = vperm.xlu0 %1110, %v1445_v26  }
  0x98   : > { %541 = vperm.xlu1 %1109, %v1436_v20  }
  0x99   : > { %553 = vperm.xlu0 %1110, %v1451_v30  }
  0x9c   : > { %549 = vperm.xlu1 %1109, %v1442_v24  }
  0x9d   : > { %561 = vperm.xlu0 %1110, %v1457_v33  }
  0xa0   : > { %557 = vperm.xlu1 %1109, %v1448_v28  }
  0xa1   : > { %1111 = vset.pattern.permute.xlu0 %v1283_v36 }
  0xa2   : > { %605 = vperm.xlu0 %1111, %v1415_v0  }
  0xa4   : > { %565 = vperm.xlu1 %1109, %v1454_v32  }
  0xa6   : > { %617 = vperm.xlu0 %1111, %v1418_v2  }
  0xa8   : > { %1112 = vset.pattern.permute.xlu1 %v1283_v36 }
  0xa9   : > { %609 = vperm.xlu1 %1112, %v1421_v6  }
  0xaa   : > { %1114 = vset.pattern.permute.xlu0 %v1284_v37 }
  0xab   : > { %709 = vperm.xlu0 %1114, %v1421_v6  }
  0xad   : > { %613 = vperm.xlu1 %1112, %v1413_v62  }
  0xaf   : > { %717 = vperm.xlu0 %1114, %v1418_v2  }
  0xb1   : > { %1113 = vset.pattern.permute.xlu1 %v1284_v37 }
  0xb2   : > { %705 = vperm.xlu1 %1113, %v1415_v0  }
  0xb3   : > { %721 = vperm.xlu0 %1114, %v1427_v13  }
  0xb6   : > { %713 = vperm.xlu1 %1113, %v1413_v62   ;;  %v1554_v62 = vrot.slane %v1541_v57, %v386_v58  ;;  %v570_v58 = vsub.s32 2, %v1532_v52 }
  0xb7   : > { %725 = vperm.xlu0 %1114, %v1424_v10  }
  0xba   : > { %1115 = vset.pattern.permute.xlu1 %v1283_v36 }
  0xbb   : > { %729 = vperm.xlu0 %1114, %v1433_v18   ;;  %621 = vperm.xlu1 %1115, %v1427_v13  }
  0xbd   : > { %v317_v38 = vpop.permute.xlu1 %316 }
  0xbe   : > { %v307_v39 = vpop.permute.xlu0 %306  ;;  %v390_v8 = vsub.f32 %v317_v38, %v1554_v62 }
  0xbf   : > { %733 = vperm.xlu0 %1114, %v1430_v16   ;;  %625 = vperm.xlu1 %1115, %v1424_v10   ;;  %v388_v3 = vsub.f32 %v307_v39, %v1554_v62 }
  0xc1   : > { %v322_v40 = vpop.permute.xlu1 %321 }
  0xc2   : > { %v312_v41 = vpop.permute.xlu0 %311  ;;  %v391_v11 = vsub.f32 %v322_v40, %v1554_v62 }
  0xc3   : > { %737 = vperm.xlu0 %1114, %v1439_v22   ;;  %629 = vperm.xlu1 %1115, %v1433_v18   ;;  %v389_v0 = vsub.f32 %v312_v41, %v1554_v62 }
  0xc5   : > { %v332_v42 = vpop.permute.xlu1 %331 }
  0xc6   : > { %v327_v44 = vpop.permute.xlu0 %326  ;;  %v393_v19 = vsub.f32 %v332_v42, %v1554_v62 }
  0xc7   : > { %741 = vperm.xlu0 %1114, %v1436_v20   ;;  %633 = vperm.xlu1 %1115, %v1430_v16   ;;  %v392_v16 = vsub.f32 %v327_v44, %v1554_v62 }
  0xc9   : > { %v1514_v45 = vpop.permute.xlu1 %341 }
  0xca   : > { %v1516_v46 = vpop.permute.xlu0 %336  ;;  %v395_v27 = vsub.f32 %v1514_v45, %v1554_v62 }
  0xcb   : > { %745 = vperm.xlu0 %1114, %v1445_v26   ;;  %637 = vperm.xlu1 %1115, %v1439_v22  }
  0xcd   : > { %v1520_v47 = vpop.permute.xlu1 %351 }
  0xce   : > { %v1522_v48 = vpop.permute.xlu0 %346  ;;  %v397_v36 = vsub.f32 %v1520_v47, %v1554_v62 }
  0xcf   : > { %749 = vperm.xlu0 %1114, %v1442_v24   ;;  %641 = vperm.xlu1 %1115, %v1436_v20  }
  0xd1   : > { %v1526_v50 = vpop.permute.xlu1 %361 }
  0xd2   : > { %v1528_v51 = vpop.permute.xlu0 %356  ;;  %v399_v43 = vsub.f32 %v1526_v50, %v1554_v62 }
  0xd3   : > { %753 = vperm.xlu0 %1114, %v1451_v30   ;;  %645 = vperm.xlu1 %1115, %v1445_v26  }
  0xd5   : > { %v1534_v53 = vpop.permute.xlu1 %371 }
  0xd6   : > { %v1536_v55 = vpop.permute.xlu0 %366 }
  0xd7   : > { %757 = vperm.xlu0 %1114, %v1448_v28   ;;  %649 = vperm.xlu1 %1115, %v1442_v24   ;;  %v394_v24 = vsub.f32 %v1516_v46, %v1554_v62 }
  0xd9   : > { %v1544_v59 = vpop.permute.xlu1 %381 }
  0xda   : > { %v1546_v60 = vpop.permute.xlu0 %376 }
  0xdb   : > { %761 = vperm.xlu0 %1114, %v1457_v33   ;;  %653 = vperm.xlu1 %1115, %v1451_v30  }
  0xde   : > { %v410_v63 = vpop.permute.xlu1 %409 }
  0xdf   : > { %v473_v1 = vsub.f32 %v410_v63, %v1551_v61  ;;  %v406_v2 = vpop.permute.xlu0 %405  ;;  %657 = vperm.xlu1 %1115, %v1448_v28  }
  0xe0   : > { %v472_v4 = vsub.f32 %v406_v2, %v1551_v61 }
  0xe1   : > { %v1561_v5 = vmin.f32 %v389_v0, %v473_v1  ;;  %v402_v1 = vsub.f32 %v1546_v60, %v1554_v62 }
  0xe2   : > { %v1563_v6 = vmin.f32 %v388_v3, %v472_v4  ;;  %v414_v7 = vpop.permute.xlu1 %413  ;;  %v403_v3 = vsub.f32 %v1544_v59, %v1554_v62 }
  0xe3   : > { %v474_v9 = vsub.f32 %v414_v7, %v1551_v61  ;;  %v418_v10 = vpop.permute.xlu0 %417  ;;  %661 = vperm.xlu1 %1115, %v1457_v33   ;;  %v396_v33 = vsub.f32 %v1522_v48, %v1554_v62  ;;  %v400_v48 = vsub.f32 %v1536_v55, %v1554_v62 }
  0xe4   : > { %v475_v12 = vsub.f32 %v418_v10, %v1551_v61 }
  0xe5   : > { %v490_v13 = vmin.f32 %v390_v8, %v474_v9 }
  0xe6   : > { %v1570_v14 = vmin.f32 %v391_v11, %v475_v12  ;;  %v422_v15 = vpop.permute.xlu1 %421 }
  0xe7   : > { %v476_v17 = vsub.f32 %v422_v15, %v1551_v61  ;;  %v426_v18 = vpop.permute.xlu0 %425  ;;  %665 = vperm.xlu1 %1115, %v1454_v32  }
  0xe8   : > { %v477_v20 = vsub.f32 %v426_v18, %v1551_v61 }
  0xe9   : > { %v1577_v21 = vmin.f32 %v392_v16, %v476_v17 }
  0xea   : > { %v493_v22 = vmin.f32 %v393_v19, %v477_v20  ;;  %v430_v23 = vpop.permute.xlu1 %429 }
  0xeb   : > { %v478_v25 = vsub.f32 %v430_v23, %v1551_v61  ;;  %v434_v26 = vpop.permute.xlu0 %433  ;;  %1116 = vset.pattern.permute.xlu1 %v1284_v37 }
  0xec   : > { %v479_v28 = vsub.f32 %v434_v26, %v1551_v61  ;;  %765 = vperm.xlu1 %1116, %v1454_v32   ;;  %v398_v32 = vsub.f32 %v1528_v51, %v1554_v62  ;;  %v401_v51 = vsub.f32 %v1534_v53, %v1554_v62  ;;  %v1621_v53 = vrot.slane %v1541_v57, %v570_v58 }
  0xed   : > { %v1587_v29 = vmin.f32 %v394_v24, %v478_v25 }
  0xee   : > { %v495_v30 = vmin.f32 %v395_v27, %v479_v28  ;;  %v438_v31 = vpop.permute.xlu1 %437 }
  0xef   : > { %v480_v34 = vsub.f32 %v438_v31, %v1551_v61  ;;  %v442_v35 = vpop.permute.xlu0 %441 }
  0xf0   : > { %v481_v37 = vsub.f32 %v442_v35, %v1551_v61 }
  0xf1   : > { %v1595_v38 = vmin.f32 %v396_v33, %v480_v34 }
  0xf2   : > { %v497_v39 = vmin.f32 %v397_v36, %v481_v37  ;;  %v446_v40 = vpop.permute.xlu1 %445 }
  0xf3   : > { %v482_v41 = vsub.f32 %v446_v40, %v1551_v61  ;;  %v450_v42 = vpop.permute.xlu0 %449 }
  0xf4   : > { %v483_v44 = vsub.f32 %v450_v42, %v1551_v61  ;;  %v770_v42 = vsub.s32 4, %v1532_v52 }
  0xf5   : > { %v1603_v45 = vmin.f32 %v398_v32, %v482_v41  ;;  %v670_v32 = vsub.s32 3, %v1532_v52 }
  0xf6   : > { %v499_v46 = vmin.f32 %v399_v43, %v483_v44  ;;  %v454_v47 = vpop.permute.xlu1 %453 }
  0xf7   : > { %v484_v49 = vsub.f32 %v454_v47, %v1551_v61  ;;  %v458_v54 = vpop.permute.xlu0 %457 }
  0xf8   : > { %v485_v56 = vsub.f32 %v458_v54, %v1551_v61 }
  0xf9   : > { %v1612_v50 = vmin.f32 %v400_v48, %v484_v49  ;;  %v1669_v49 = vrot.slane %v1541_v57, %v770_v42  ;;  %v825_v42 = vadd.s32 32, %v1532_v52 }
  0xfa   : > { %v501_v63 = vmin.f32 %v401_v51, %v485_v56  ;;  %v462_v0 = vpop.permute.xlu1 %461 }
  0xfb   : > { %v486_v2 = vsub.f32 %v462_v0, %v1551_v61  ;;  %v466_v55 = vpop.permute.xlu0 %465 }
  0xfc   : > { %v487_v4 = vsub.f32 %v466_v55, %v1551_v61  ;;  %v1677_v55 = vstv %s1023_s22 }
  0xfd   : > { %v1623_v7 = vmin.f32 %v402_v1, %v486_v2  ;;  %v822_v1 = vadd.s32 8, %v1532_v52 }
  0xfe   : > { %v503_v8 = vmin.f32 %v403_v3, %v487_v4 }
  0xff   : > { %v506_v9 = vpop.permute.xlu1 %505 }
 0x100   : > { %v572_v10 = vsub.f32 %v506_v9, %v1621_v53  ;;  %v510_v11 = vpop.permute.xlu0 %509 }
 0x101   : > { %v573_v44 = vsub.f32 %v510_v11, %v1621_v53 }
 0x102   : > { %v588_v60 = vmin.f32 %v1563_v6, %v572_v10  ;;  %v823_v10 = vadd.s32 16, %v1532_v52 }
 0x103   : > { %v514_v12 = vpop.permute.xlu1 %513  ;;  %v589_v51 = vmin.f32 %v1561_v5, %v573_v44  ;;  %v839_v5 = vadd.s32 %v1677_v55, %v1532_v52 }
 0x104   : > { %v574_v15 = vsub.f32 %v514_v12, %v1621_v53  ;;  %v1628_v16 = vpop.permute.xlu0 %521 }
 0x105   : > { %vm855_vm1 = vcmp.lt.s32.totalorder %v839_v5, 200 }
 0x106   : > { %v1630_v59 = vmin.f32 %v490_v13, %v574_v15 }
 0x107   : > { %v518_v61 = vpop.permute.xlu1 %517 }
 0x108   : > { %v575_v62 = vsub.f32 %v518_v61, %v1621_v53  ;;  %v1633_v17 = vpop.permute.xlu0 %529 }
 0x10a   : > { %v591_v18 = vmin.f32 %v1570_v14, %v575_v62 }
 0x10b   : > { %v526_v19 = vpop.permute.xlu1 %525 }
 0x10c   : > { %v577_v20 = vsub.f32 %v526_v19, %v1621_v53  ;;  %v1637_v23 = vpop.permute.xlu0 %537  ;;  %v824_v19 = vadd.s32 24, %v1532_v52 }
 0x10e   : > { %v1639_v6 = vmin.f32 %v493_v22, %v577_v20 }
 0x10f   : > { %v534_v24 = vpop.permute.xlu1 %533 }
 0x110   : > { %v579_v25 = vsub.f32 %v534_v24, %v1621_v53  ;;  %v1642_v26 = vpop.permute.xlu0 %545 }
 0x112   : > { %v1644_v13 = vmin.f32 %v495_v30, %v579_v25 }
 0x113   : > { %v542_v27 = vpop.permute.xlu1 %541 }
 0x114   : > { %v581_v28 = vsub.f32 %v542_v27, %v1621_v53  ;;  %v1647_v31 = vpop.permute.xlu0 %553  ;;  %v841_v27 = vadd.s32 %v1677_v55, %v823_v10 }
 0x116   : > { %v1649_v14 = vmin.f32 %v497_v39, %v581_v28  ;;  %vm857_vm2 = vcmp.lt.s32.totalorder %v841_v27, 200 }
 0x117   : > { %v550_v33 = vpop.permute.xlu1 %549 }
 0x118   : > { %v583_v34 = vsub.f32 %v550_v33, %v1621_v53  ;;  %v1652_v35 = vpop.permute.xlu0 %561 }
 0x11a   : > { %v1654_v22 = vmin.f32 %v499_v46, %v583_v34  ;;  %v1666_v46 = vrot.slane %v1541_v57, %v670_v32  ;;  %v842_v32 = vadd.s32 %v1677_v55, %v824_v19 }
 0x11b   : > { %v558_v36 = vpop.permute.xlu1 %557 }
 0x11c   : > { %v585_v37 = vsub.f32 %v558_v36, %v1621_v53  ;;  %vm858_vm3 = vcmp.lt.s32.totalorder %v842_v32, 200 }
 0x11d   : > { %v606_v30 = vpop.permute.xlu0 %605 }
 0x11e   : > { %v1657_v40 = vmin.f32 %v501_v63, %v585_v37  ;;  %v672_v2 = vsub.f32 %v606_v30, %v1666_v46  ;;  %v576_v30 = vsub.f32 %v1628_v16, %v1621_v53  ;;  %v843_v16 = vadd.s32 %v1677_v55, %v825_v42 }
 0x11f   : > { %v566_v41 = vpop.permute.xlu1 %565  ;;  %v829_v42 = vadd.s32 64, %v1532_v52 }
 0x120   : > { %v587_v39 = vsub.f32 %v566_v41, %v1621_v53  ;;  %v688_v11 = vmin.f32 %v588_v60, %v672_v2  ;;  %vm859_vm4 = vcmp.lt.s32.totalorder %v843_v16, 200 }
 0x121   : > { %v618_v43 = vpop.permute.xlu0 %617 }
 0x122   : > { %v1663_v47 = vmin.f32 %v503_v8, %v587_v39  ;;  %v675_v57 = vsub.f32 %v618_v43, %v1666_v46  ;;  %v840_v8 = vadd.s32 %v1677_v55, %v822_v1 }
 0x124   : > { %v610_v48 = vpop.permute.xlu1 %609  ;;  %v691_v20 = vmin.f32 %v591_v18, %v675_v57  ;;  %vm856_vm0 = vcmp.lt.s32.totalorder %v840_v8, 200  ;;  %v578_v8 = vsub.f32 %v1633_v17, %v1621_v53 }
 0x125   : > { %v673_v54 = vsub.f32 %v610_v48, %v1666_v46 }
 0x126   : > { %v710_v56 = vpop.permute.xlu0 %709 }
 0x127   : > { %v689_v58 = vmin.f32 %v589_v51, %v673_v54  ;;  %v773_v63 = vsub.f32 %v710_v56, %v1669_v49  ;;  %v592_v51 = vmin.f32 %v1577_v21, %v576_v30  ;;  %v580_v30 = vsub.f32 %v1637_v23, %v1621_v53 }
 0x128   : > { %v614_v0 = vpop.permute.xlu1 %613 }
 0x129   : > { %v789_v4 = vmin.f32 %v689_v58, %v773_v63  ;;  %v674_v12 = vsub.f32 %v614_v0, %v1666_v46  ;;  %v826_v63 = vadd.s32 40, %v1532_v52 }
 0x12a   : > { %v718_v3 = vpop.permute.xlu0 %717 }
 0x12b   : > { %v775_v15 = vsub.f32 %v718_v3, %v1669_v49  ;;  %v805_v24 = vmax.f32 %v789_v4, -34.538776  ;;  %v690_v33 = vmin.f32 %v1630_v59, %v674_v12  ;;  %v844_v10 = vadd.s32 %v1677_v55, %v826_v63 }
 0x12c   : > { %v847_v63 = vadd.s32 %v1677_v55, %v829_v42 }
 0x12d   : > { %v706_v9 = vpop.permute.xlu1 %705  ;;  %v791_v60 = vmin.f32 %v691_v20, %v775_v15  ;;  %v872_v18 = vsel %vm856_vm0, %v805_v24, 0.0  ;;  %v594_v20 = vmin.f32 %v1587_v29, %v578_v8  ;;  %vm860_vm5 = vcmp.lt.s32.totalorder %v844_v10, 200 }
 0x12e   : > { %v772_v61 = vsub.f32 %v706_v9, %v1669_v49  ;;  %v722_v62 = vpop.permute.xlu0 %721  ;;  %vm863_vm8 = vcmp.lt.s32.totalorder %v847_v63, 200  ;;  %v831_v10 = vadd.s32 80, %v1532_v52 }
 0x12f   : > { %v807_v44 = vmax.f32 %v791_v60, -34.538776  ;;  %v776_v0 = vsub.f32 %v722_v62, %v1669_v49 }
 0x130   : > { %v788_v25 = vmin.f32 %v688_v11, %v772_v61  ;;  %v827_v11 = vadd.s32 48, %v1532_v52 }
 0x131   : > { %v714_v28 = vpop.permute.xlu1 %713  ;;  %v874_v3 = vsel %vm858_vm3, %v807_v44, 0.0 }
 0x132   : > { %v804_v34 = vmax.f32 %v788_v25, -34.538776  ;;  %v774_v36 = vsub.f32 %v714_v28, %v1669_v49  ;;  %v726_v37 = vpop.permute.xlu0 %725  ;;  %v845_v28 = vadd.s32 %v1677_v55, %v827_v11 }
 0x133   : > { %v777_v12 = vsub.f32 %v726_v37, %v1669_v49 }
 0x134   : > { %v871_v41 = vsel %vm855_vm1, %v804_v34, 0.0  ;;  %v790_v39 = vmin.f32 %v690_v33, %v774_v36  ;;  %v828_v33 = vadd.s32 56, %v1532_v52  ;;  %vm861_vm6 = vcmp.lt.s32.totalorder %v845_v28, 200 }
 0x135   : > { %v888_v43 = vadd.f32 %v872_v18, %v871_v41 }
 0x136   : > { %v806_v48 = vmax.f32 %v790_v39, -34.538776  ;;  %v730_v59 = vpop.permute.xlu0 %729  ;;  %v622_v54 = vpop.permute.xlu1 %621  ;;  %v846_v39 = vadd.s32 %v1677_v55, %v828_v33 }
 0x137   : > { %v676_v56 = vsub.f32 %v622_v54, %v1666_v46  ;;  %v778_v60 = vsub.f32 %v730_v59, %v1669_v49 }
 0x138   : > { %v873_v58 = vsel %vm857_vm2, %v806_v48, 0.0  ;;  %vm862_vm7 = vcmp.lt.s32.totalorder %v846_v39, 200 }
 0x139   : > { %v889_v1 = vadd.f32 %v888_v43, %v873_v58  ;;  %v692_v2 = vmin.f32 %v592_v51, %v676_v56  ;;  %v596_v51 = vmin.f32 %v1595_v38, %v580_v30 }
 0x13a   : > { %v734_v57 = vpop.permute.xlu0 %733  ;;  %v626_v4 = vpop.permute.xlu1 %625 }
 0x13b   : > { %v890_v5 = vadd.f32 %v889_v1, %v874_v3  ;;  %v792_v21 = vmin.f32 %v692_v2, %v776_v0  ;;  %v677_v9 = vsub.f32 %v626_v4, %v1666_v46  ;;  %v779_v43 = vsub.f32 %v734_v57, %v1669_v49 }
 0x13c   : > { %v830_v0 = vadd.s32 72, %v1532_v52 }
 0x13d   : > { %v808_v15 = vmax.f32 %v792_v21, -34.538776  ;;  %v693_v61 = vmin.f32 %v1639_v6, %v677_v9 }
 0x13e   : > { %v738_v62 = vpop.permute.xlu0 %737  ;;  %v630_v19 = vpop.permute.xlu1 %629  ;;  %v848_v9 = vadd.s32 %v1677_v55, %v830_v0 }
 0x13f   : > { %v875_v24 = vsel %vm859_vm4, %v808_v15, 0.0  ;;  %v793_v17 = vmin.f32 %v693_v61, %v777_v12  ;;  %v678_v25 = vsub.f32 %v630_v19, %v1666_v46  ;;  %v780_v1 = vsub.f32 %v738_v62, %v1669_v49 }
 0x140   : > { %v891_v27 = vadd.f32 %v890_v5, %v875_v24  ;;  %vm864_vm9 = vcmp.lt.s32.totalorder %v848_v9, 200 }
 0x141   : > { %v809_v34 = vmax.f32 %v793_v17, -34.538776  ;;  %v694_v36 = vmin.f32 %v594_v20, %v678_v25  ;;  %v849_v17 = vadd.s32 %v1677_v55, %v831_v10  ;;  %v832_v25 = vadd.s32 88, %v1532_v52 }
 0x142   : > { %v742_v37 = vpop.permute.xlu0 %741  ;;  %v634_v6 = vpop.permute.xlu1 %633 }
 0x143   : > { %v876_v29 = vsel %vm860_vm5, %v809_v34, 0.0  ;;  %v794_v32 = vmin.f32 %v694_v36, %v778_v60  ;;  %v679_v18 = vsub.f32 %v634_v6, %v1666_v46  ;;  %v781_v11 = vsub.f32 %v742_v37, %v1669_v49 }
 0x144   : > { %v892_v41 = vadd.f32 %v891_v27, %v876_v29  ;;  %vm865_vm10 = vcmp.lt.s32.totalorder %v849_v17, 200  ;;  %v850_v30 = vadd.s32 %v1677_v55, %v832_v25  ;;  %v833_v29 = vadd.s32 96, %v1532_v52 }
 0x145   : > { %v810_v44 = vmax.f32 %v794_v32, -34.538776  ;;  %v695_v48 = vmin.f32 %v1644_v13, %v679_v18  ;;  %v582_v13 = vsub.f32 %v1642_v26, %v1621_v53 }
 0x146   : > { %v746_v59 = vpop.permute.xlu0 %745  ;;  %v638_v54 = vpop.permute.xlu1 %637  ;;  %vm866_vm11 = vcmp.lt.s32.totalorder %v850_v30, 200  ;;  %v887_v30 = vld [vmem:[#allocation2] sm:$0x1] }
 0x147   : > { %v877_v23 = vsel %vm861_vm6, %v810_v44, 0.0  ;;  %v795_v56 = vmin.f32 %v695_v48, %v779_v43  ;;  %v680_v58 = vsub.f32 %v638_v54, %v1666_v46  ;;  %v598_v62 = vmin.f32 %v1603_v45, %v582_v13 }
 0x148   : > { %v893_v16 = vadd.f32 %v892_v41, %v877_v23  ;;  %v782_v27 = vsub.f32 %v746_v59, %v1669_v49  ;;  %v851_v54 = vadd.s32 %v1677_v55, %v833_v29 }
 0x149   : > { %v811_v2 = vmax.f32 %v795_v56, -34.538776  ;;  %v696_v3 = vmin.f32 %v596_v51, %v680_v58  ;;  %v834_v51 = vadd.s32 104, %v1532_v52 }
 0x14a   : > { %v642_v57 = vpop.permute.xlu1 %641  ;;  %v750_v21 = vpop.permute.xlu0 %749  ;;  %vm867_vm12 = vcmp.lt.s32.totalorder %v851_v54, 200 }
 0x14b   : > { %v878_v4 = vsel %vm862_vm7, %v811_v2, 0.0  ;;  %v796_v38 = vmin.f32 %v696_v3, %v780_v1  ;;  %v681_v8 = vsub.f32 %v642_v57, %v1666_v46  ;;  %v783_v32 = vsub.f32 %v750_v21, %v1669_v49 }
 0x14c   : > { %v894_v5 = vadd.f32 %v893_v16, %v878_v4  ;;  %v852_v2 = vadd.s32 %v1677_v55, %v834_v51  ;;  %v835_v3 = vadd.s32 112, %v1532_v52 }
 0x14d   : > { %v812_v12 = vmax.f32 %v796_v38, -34.538776  ;;  %v697_v15 = vmin.f32 %v1649_v14, %v681_v8  ;;  %v584_v14 = vsub.f32 %v1647_v31, %v1621_v53 }
 0x14e   : > { %v646_v61 = vpop.permute.xlu1 %645  ;;  %v754_v60 = vpop.permute.xlu0 %753  ;;  %vm868_vm13 = vcmp.lt.s32.totalorder %v852_v2, 200  ;;  %v853_v10 = vadd.s32 %v1677_v55, %v835_v3 }
 0x14f   : > { %v879_v26 = vsel %vm863_vm8, %v812_v12, 0.0  ;;  %v797_v19 = vmin.f32 %v697_v15, %v781_v11  ;;  %v682_v20 = vsub.f32 %v646_v61, %v1666_v46  ;;  %v600_v42 = vmin.f32 %v1612_v50, %v584_v14 }
 0x150   : > { %v895_v24 = vadd.f32 %v894_v5, %v879_v26  ;;  %v784_v23 = vsub.f32 %v754_v60, %v1669_v49  ;;  %vm869_vm14 = vcmp.lt.s32.totalorder %v853_v10, 200 }
 0x151   : > { %v813_v28 = vmax.f32 %v797_v19, -34.538776  ;;  %v698_v33 = vmin.f32 %v598_v62, %v682_v20 }
 0x152   : > { %v650_v34 = vpop.permute.xlu1 %649  ;;  %v758_v59 = vpop.permute.xlu0 %757 }
 0x153   : > { %v880_v45 = vsel %vm864_vm9, %v813_v28, 0.0  ;;  %v798_v36 = vmin.f32 %v698_v33, %v782_v27  ;;  %v683_v37 = vsub.f32 %v650_v34, %v1666_v46  ;;  %v785_v57 = vsub.f32 %v758_v59, %v1669_v49 }
 0x154   : > { %v896_v6 = vadd.f32 %v895_v24, %v880_v45 }
 0x155   : > { %v814_v18 = vmax.f32 %v798_v36, -34.538776  ;;  %v699_v41 = vmin.f32 %v1654_v22, %v683_v37  ;;  %v586_v22 = vsub.f32 %v1652_v35, %v1621_v53 }
 0x156   : > { %v654_v39 = vpop.permute.xlu1 %653  ;;  %v762_v38 = vpop.permute.xlu0 %761 }
 0x157   : > { %v881_v43 = vsel %vm865_vm10, %v814_v18, 0.0  ;;  %v799_v31 = vmin.f32 %v699_v41, %v783_v32  ;;  %v684_v44 = vsub.f32 %v654_v39, %v1666_v46  ;;  %v602_v5 = vmin.f32 %v1623_v7, %v586_v22 }
 0x158   : > { %v897_v48 = vadd.f32 %v896_v6, %v881_v43  ;;  %v786_v11 = vsub.f32 %v762_v38, %v1669_v49 }
 0x159   : > { %v815_v56 = vmax.f32 %v799_v31, -34.538776  ;;  %v700_v58 = vmin.f32 %v600_v42, %v684_v44 }
 0x15a   : > { %v658_v16 = vpop.permute.xlu1 %657 }
 0x15b   : > { %v882_v50 = vsel %vm866_vm11, %v815_v56, 0.0  ;;  %v800_v63 = vmin.f32 %v700_v58, %v784_v23  ;;  %v685_v0 = vsub.f32 %v658_v16, %v1666_v46 }
 0x15c   : > { %v898_v1 = vadd.f32 %v897_v48, %v882_v50 }
 0x15d   : > { %v816_v13 = vmax.f32 %v800_v63, -34.538776  ;;  %v701_v4 = vmin.f32 %v1657_v40, %v685_v0  ;;  %v836_v40 = vadd.s32 120, %v1532_v52 }
 0x15e   : > { %v662_v8 = vpop.permute.xlu1 %661 }
 0x15f   : > { %v883_v53 = vsel %vm867_vm12, %v816_v13, 0.0  ;;  %v801_v35 = vmin.f32 %v701_v4, %v785_v57  ;;  %v686_v21 = vsub.f32 %v662_v8, %v1666_v46  ;;  %v854_v17 = vadd.s32 %v1677_v55, %v836_v40 }
 0x160   : > { %v899_v9 = vadd.f32 %v898_v1, %v883_v53 }
 0x161   : > { %v817_v12 = vmax.f32 %v801_v35, -34.538776  ;;  %v702_v15 = vmin.f32 %v602_v5, %v686_v21  ;;  %vm870_vm15 = vcmp.lt.s32.totalorder %v854_v17, 200 }
 0x162   : > { %v666_v61 = vpop.permute.xlu1 %665 }
 0x163   : > { %v884_v62 = vsel %vm868_vm13, %v817_v12, 0.0  ;;  %v802_v26 = vmin.f32 %v702_v15, %v786_v11  ;;  %v687_v7 = vsub.f32 %v666_v61, %v1666_v46 }
 0x164   : > { %v900_v19 = vadd.f32 %v899_v9, %v884_v62 }
 0x165   : > { %v818_v20 = vmax.f32 %v802_v26, -34.538776  ;;  %v703_v27 = vmin.f32 %v1663_v47, %v687_v7 }
 0x167   : > { %v885_v24 = vsel %vm869_vm14, %v818_v20, 0.0  ;;  %v766_v25 = vpop.permute.xlu1 %765 }
 0x168   : > { %v787_v28 = vsub.f32 %v766_v25, %v1669_v49  ;;  %v901_v33 = vadd.f32 %v900_v19, %v885_v24 }
 0x16a   : > { %v803_v60 = vmin.f32 %v703_v27, %v787_v28 }
 0x16c   : > { %v819_v34 = vmax.f32 %v803_v60, -34.538776 }
 0x16e   : > { %v886_v14 = vsel %vm870_vm15, %v819_v34, 0.0 }
 0x16f   : > { %v902_v45 = vadd.f32 %v901_v33, %v886_v14 }
 0x171   : > { %v903_v52 = vrot.slane %v902_v45, 4 }
 0x173   : > { %v904_v36 = vadd.f32 %v903_v52, %v902_v45 }
 0x175   : > { %v905_v37 = vrot.slane %v904_v36, 2 }
 0x177   : > { %v906_v6 = vadd.f32 %v905_v37, %v904_v36 }
 0x179   : > { %v907_v46 = vrot.slane %v906_v6, 1 }
 0x17b   : > { %v908_v29 = vadd.f32 %v907_v46, %v906_v6  ;;  %914 = sbr.rel (%p1024_p1) target bundleno = 412 (0x19c), region = 40 }
 0x17d   : > { %v909_v32 = vadd.f32 %v908_v29, %v887_v30 }
 0x17f   : > { %910 = vst [vmem:[#allocation2] sm:$0x1] %v909_v32 }
 0x180   : > { %v918_v55 = vstv %s915_s27 }
 0x186   : > { %v916_v47 = vld [vmem:[#allocation2] sm:$0x1] }
 0x187   : > { %v917_v49 = vmul.f32 0.005, %v916_v47 }
 0x189   : > { %v919_v18 = vsub.f32 %v918_v55, %v917_v49 }
 0x18b   : > { %v920_v41 = vmul.f32 1.442695, %v919_v18 }
 0x18d   : > { %1183 = vpow2.f32 %v920_v41 }
 0x19a   : > { %v1184_v39 = vpop.eup %1183 }
 0x19b   : > { %922 = vst [vmem:[%s1394_s0] sm:$0x1] %v1184_v39 }
 0x19c PF: > { %s1025_s28 = sshll.u32 %s1265_s18, 4  ;;  %s936_s6 = sshll.u32 %s1394_s0, 4  ;;  %s937_s6 = int_to_ptr.vmem [resolvable:$true] %s936_s6 }
 0x19d   : > { %s934_s17 = scalar_lea.hbm %s1816_s3, %s1025_s28  ;;  %s924_s7 = scalar_lea.sflag [#allocation5], %s188_s30 }
 0x19e   : > { %s1185_s8 = scalar_lea.vmem %s937_s6, 16  ;;  %s1285_s9 = smov [#allocation4]  }
 0x19f   : > { %p1186_p2 = scmp.ne.s32.totalorder %s937_s6, %s1185_s8  ;;  %s1189_s10 = sshll.u32 %s1285_s9, 4  ;;  %s1190_s10 = int_to_ptr.vmem [resolvable:$false] %s1189_s10 }
 0x1a0   : > { %s1191_s11 = scalar_lea.vmem %s1190_s10, 32  ;;  %p1192_p6 = scmp.lt.s32.totalorder %s937_s6, %s1190_s10 }
 0x1a1   : > { %p1187_p4 = pnand %p1186_p2, %p1358_p3  ;;  %p1193_p7 = scmp.lt.s32.totalorder %s1191_s11, %s1185_s8 }
 0x1a3   : > { %p1188_p5 = pneg %p1187_p4  ;;  %p1194_p8 = por %p1193_p7, %p1192_p6 }
 0x1a5   : > { %p1195_p10 = pnand %p1194_p8, %p1188_p5 }
 0x1a7   : > { %1198 = shalt.err (!%p1195_p10)
}
 0x1a8   : > { %s1199_s18 = scalar_lea.hbm %s934_s17, 16  ;;  %s1203_s13 = scalar_lea.hbm %s1816_s3, 32 }
 0x1a9   : > { %p1200_p11 = scmp.ne.s32.totalorder %s934_s17, %s1199_s18  ;;  %p1204_p0 = scmp.lt.s32.totalorder %s934_s17, %s1816_s3 }
 0x1aa   : > { %p1205_p1 = scmp.lt.s32.totalorder %s1203_s13, %s1199_s18 }
 0x1ab   : > { %p1201_p12 = pnand %p1200_p11, %p1358_p3 }
 0x1ac   : > { %p1206_p2 = por %p1205_p1, %p1204_p0 }
 0x1ad   : > { %p1202_p13 = pneg %p1201_p12 }
 0x1af   : > { %p1207_p4 = pnand %p1206_p2, %p1202_p13 }
 0x1b1   : > { %1210 = shalt.err (!%p1207_p4)
}
 0x1b2   : > { %1028 = dma.vmem_to_hbm [thread:$0]  (%p1358_p3), %s937_s6, 16, %s934_s17, %s924_s7  }
 0x1b3 PF: > { %p1034_p5 = scmp.ge.s32.totalorder %s1277_s21, 2  ;;  %s948_s27 = sand.u32 1, %s1249_s14  }
 0x1b4   : > { %s949_s28 = scalar_lea.sflag [#allocation5], %s948_s27 }
 0x1b5   : > { %p1031_p6 = pnand %p1034_p5, %p1368_p9 }
 0x1b7   : > { %p1032_p7 = pneg %p1031_p6 }
 0x1b9   : > { %1244 = dma.done.wait (%p1032_p7), %s949_s28, 16  }
 0x1ba   : > { %1246 = vsyncadd (%p1032_p7), %s949_s28, 4294967280  ;;  %s17_s21 = sadd.s32 1, %s1277_s21   ;;  %s1819_s14 = smov %s1253_s15 }
 0x1bb   : > { %p14_p8 = scmp.ge.s32.totalorder %s17_s21, 6   ;;  %s1820_s15 = smov %s1257_s16 }
 0x1bc   : > { %s1821_s16 = smov %s1376_s29  ;;  %s1822_s17 = smov %s1269_s19 }
 0x1bd   : > { %s1823_s18 = smov %s1273_s20  ;;  %s1824_s19 = smov %s1827_s23 }
 0x1be   : > { %s1825_s20 = smov %s1831_s24  ;;  %16 = sbr.rel (!%p14_p8) target bundleno = 7 (0x7), region = 78 }
 0x1c3   :  { %953 = vsyncpa [#allocation5], 1 }
 0x1c4   :  { %955 = vsyncpa [#allocation5 + $0x1], 1 }

</bundles_post_ra>
